<compile_context>
chip_gen: v5e
topology: v5e:2x2
jax: 0.10.0
libtpu: 0.0.40
codegen_flags: <defaults>
</compile_context>

<pallas_src>
import numpy as np
import jax
import jax.numpy as jnp
from jax.experimental import pallas as pl
from jax.experimental.pallas import tpu as pltpu

LANE = 128                        # TPU lane width
VMEM_BUDGET = 12 * 1024 * 1024    # fits v5e 16 MiB default scoped VMEM (v6e/v7x: 32 MiB)


def shift_kernel(x_ref, cen_ref, hinv_ref, o_ref):
    # Lane-dense layout: the big point axis N sits on lanes, centers on sublanes.
    #   x_ref:    (1, TILE_N)  sample-point row  (broadcast down sublanes)
    #   cen_ref:  (n, 1)       centers column    (broadcast across lanes)
    #   hinv_ref: (n, 1)       precomputed 1/h   (multiply, not divide)
    #   o_ref:    (n, TILE_N)  (x - cen) * (1/h), full-width unmasked stores
    o_ref[...] = (x_ref[...] - cen_ref[...]) * hinv_ref[...]


def _choose_tile(N, n, tile_n):
    """Pick a lane-multiple tile: big enough to amortize per-step overhead,
    small enough for v5e's scoped VMEM, and <= ceil(N/2) so v7x gets >=2 steps."""
    n_pad0 = pl.cdiv(max(N, 1), LANE) * LANE
    # Padding-aware double-buffered footprint per lane column:
    #   x block (1, tile) pads to 8 sublanes; out block is (n_sub, tile).
    n_sub = pl.cdiv(max(n, 1), 8) * 8
    bytes_per_lane = 2 * (8 + n_sub) * 4
    tile_budget = max(LANE, (VMEM_BUDGET // bytes_per_lane) // LANE * LANE)
    half = pl.cdiv(pl.cdiv(n_pad0, 2), LANE) * LANE          # >=2 grid steps on v7x
    tile_req = max(LANE, (int(tile_n) // LANE) * LANE)
    tile = max(LANE, min(tile_req, tile_budget, half))
    n_pad = pl.cdiv(n_pad0, tile) * tile
    return tile, n_pad


def shift_forward_slab(x, center, fixed, h, *, tile_n=128 * 1024):
    """Lane-dense Shift: returns ((n, N_pad) slab, N).

    slab[c, p] = (x[p] - cen[c]) / h[c] for p < N; columns >= N hold finite
    garbage computed from the zero padding — slice (or mask) before reducing.
    This is the preferred form for a fused downstream RBF consumer.
    """
    x = jnp.asarray(x, jnp.float32)
    N = x.shape[0]
    cen = jnp.concatenate([jnp.asarray(center, jnp.float32),
                           jnp.asarray(fixed, jnp.float32)])[:, None]   # (n, 1)
    hinv = (1.0 / jnp.asarray(h, jnp.float32))[:, None]                 # (n, 1)
    n = cen.shape[0]

    tile, n_pad = _choose_tile(N, n, tile_n)
    grid = (n_pad // tile,)

    # Single cheap pad (no zeros+scatter round trip).
    x_row = jnp.pad(x[:, 0], (0, n_pad - N))[None, :]                   # (1, N_pad)

    slab = pl.pallas_call(
        shift_kernel,
        out_shape=jax.ShapeDtypeStruct((n, n_pad), jnp.float32),
        grid=grid,
        in_specs=[
            pl.BlockSpec((1, tile), lambda i: (0, i)),   # x tile, lane-dense, pipelined
            pl.BlockSpec((n, 1), lambda i: (0, 0)),      # centers: VMEM-resident across grid
            pl.BlockSpec((n, 1), lambda i: (0, 0)),      # 1/h:     VMEM-resident across grid
        ],
        out_specs=pl.BlockSpec((n, tile), lambda i: (0, i)),
        compiler_params=pltpu.CompilerParams(
            dimension_semantics=("parallel",)),          # shard N across TCs on v7x
    )(x_row, cen, hinv)
    return slab, N


def shift_forward(x, center, fixed, h, *, tile_n=128 * 1024):
    """Pallas forward of Shift: (x - cat(center, fixed)) / h.

    x: (N, 1) f32 sample points; center: (n_free,); fixed: (n_fixed,); h: (n,)
    Returns (N, n), matching the PyTorch module's broadcast semantics.
    Note: reciprocal-multiply may differ from true division by ~1 ulp.
    """
    slab, N = shift_forward_slab(x, center, fixed, h, tile_n=tile_n)
    # TODO(synk): this transpose is an extra HBM pass with an 8-wide store
    # pattern; fuse the downstream RBF exp + n-reduction into the kernel (or
    # consume `shift_forward_slab` directly) to eliminate it.
    return slab[:, :N].T


def make_shift_params(points, fixed_points, fixed_h=False):
    """Deterministic parameter construction mirroring Shift.__init__."""
    points = np.asarray(points, dtype=np.float32)
    fixed_points = np.asarray(fixed_points, dtype=np.float32)
    n_free = len(points)
    n_fixed = len(fixed_points)
    n = n_free + n_fixed
    if n_fixed:
        xmin = min(np.min(points), np.min(fixed_points))
        xmax = max(np.max(points), np.max(fixed_points))
    else:
        xmin, xmax = np.min(points), np.max(points)
    dx = (xmax - xmin) / n
    center = jnp.asarray(points)
    fixed = jnp.asarray(fixed_points)
    # TODO(synk): true fixed_h stores a single learnable scalar; broadcasting to
    # (n,) gives identical forward-pass math but would differ for gradients.
    h = dx * jnp.ones((n,), jnp.float32)
    return center, fixed, h


if __name__ == "__main__":
    # Small SPINN-1D-like configuration: 6 free interior centers, 2 fixed
    # boundary centers (n = 8), 16 sample points in [0, 1].
    points = np.linspace(0.1, 0.9, 6)          # free centers
    fixed_points = np.array([0.0, 1.0])        # fixed boundary centers
    center, fixed, h = make_shift_params(points, fixed_points, fixed_h=False)
    cen = jnp.concatenate([center, fixed])

    key = jax.random.PRNGKey(0)
    k0, k1 = jax.random.split(key)

    # Check 1: tiny N (single-tile path).
    x = jax.random.uniform(k0, (16, 1), dtype=jnp.float32)   # (N, 1) sample points
    out = jax.block_until_ready(shift_forward(x, center, fixed, h))
    ref = (x - cen[None, :]) / h[None, :]
    # rtol loosened slightly: reciprocal-multiply can differ from divide by ~1 ulp.
    np.testing.assert_allclose(np.asarray(out), np.asarray(ref), rtol=1e-5, atol=1e-6)

    # Check 2: N not a lane multiple -> exercises padding and the >=2-step grid
    # (tile is capped at ceil(N/2) rounded to 128, so grid=(2,) here).
    x2 = jax.random.uniform(k1, (300, 1), dtype=jnp.float32)
    out2 = jax.block_until_ready(shift_forward(x2, center, fixed, h))
    ref2 = (x2 - cen[None, :]) / h[None, :]
    np.testing.assert_allclose(np.asarray(out2), np.asarray(ref2), rtol=1e-5, atol=1e-6)

    # Check 3: lane-dense slab variant (fusion-friendly output) agrees too.
    slab, N = shift_forward_slab(x2, center, fixed, h)
    slab = jax.block_until_ready(slab)
    np.testing.assert_allclose(np.asarray(slab[:, :N].T), np.asarray(ref2),
                               rtol=1e-5, atol=1e-6)

    print("KERNEL_OK")
</pallas_src>

<mosaic_0001>
module attributes {stable_mosaic.version = 11 : i64} {
  func.func @shift_kernel(%arg0: i32, %arg1: memref<1x128xf32, #tpu.memory_space<vmem>>, %arg2: memref<8x1xf32, #tpu.memory_space<vmem>>, %arg3: memref<8x1xf32, #tpu.memory_space<vmem>>, %arg4: memref<8x128xf32, #tpu.memory_space<vmem>>) attributes {dimension_semantics = [#tpu.dimension_semantics<parallel>], iteration_bounds = array<i64: 1>, scalar_prefetch = 0 : i64, scratch_operands = 0 : i64, tpu.core_type = #tpu.core_type<tc>, window_params = [{transform_indices = @transform_0, window_bounds = array<i64: 1, 128>}, {pipeline_mode = #tpu.pipeline_mode<synchronous>, transform_indices = @transform_1, window_bounds = array<i64: 8, 1>}, {pipeline_mode = #tpu.pipeline_mode<synchronous>, transform_indices = @transform_2, window_bounds = array<i64: 8, 1>}, {transform_indices = @transform_3, window_bounds = array<i64: 8, 128>}]} {
    %c0 = arith.constant 0 : index
    %c0_0 = arith.constant 0 : index
    %0 = vector.load %arg1[%c0, %c0_0] : memref<1x128xf32, #tpu.memory_space<vmem>>, vector<1x128xf32>
    %c0_1 = arith.constant 0 : index
    %c0_2 = arith.constant 0 : index
    %1 = vector.load %arg2[%c0_1, %c0_2] : memref<8x1xf32, #tpu.memory_space<vmem>>, vector<8x1xf32>
    %2 = vector.broadcast %0 : vector<1x128xf32> to vector<8x128xf32>
    %3 = vector.broadcast %1 : vector<8x1xf32> to vector<8x128xf32>
    %4 = arith.subf %2, %3 : vector<8x128xf32>
    %c0_3 = arith.constant 0 : index
    %c0_4 = arith.constant 0 : index
    %5 = vector.load %arg3[%c0_3, %c0_4] : memref<8x1xf32, #tpu.memory_space<vmem>>, vector<8x1xf32>
    %6 = vector.broadcast %5 : vector<8x1xf32> to vector<8x128xf32>
    %7 = arith.mulf %4, %6 : vector<8x128xf32>
    %c0_5 = arith.constant 0 : index
    %c0_6 = arith.constant 0 : index
    %8 = vector.load %arg4[%c0_5, %c0_6] : memref<8x128xf32, #tpu.memory_space<vmem>>, vector<8x128xf32>
    tpu.vector_store %arg4[%c0_5, %c0_6], %7 {strides = array<i32>} : memref<8x128xf32, #tpu.memory_space<vmem>>, vector<8x128xf32>,
    return
  }
  func.func @transform_0(%arg0: i32) -> (i32, i32) {
    %c0_i32 = arith.constant 0 : i32
    %c0_i32_0 = arith.constant 0 : i32
    return %c0_i32, %arg0 : i32, i32
  }
  func.func @transform_1(%arg0: i32) -> (i32, i32) {
    %c0_i32 = arith.constant 0 : i32
    %c0_i32_0 = arith.constant 0 : i32
    %c0_i32_1 = arith.constant 0 : i32
    return %c0_i32, %c0_i32_0 : i32, i32
  }
  func.func @transform_2(%arg0: i32) -> (i32, i32) {
    %c0_i32 = arith.constant 0 : i32
    %c0_i32_0 = arith.constant 0 : i32
    %c0_i32_1 = arith.constant 0 : i32
    return %c0_i32, %c0_i32_0 : i32, i32
  }
  func.func @transform_3(%arg0: i32) -> (i32, i32) {
    %c0_i32 = arith.constant 0 : i32
    %c0_i32_0 = arith.constant 0 : i32
    return %c0_i32, %arg0 : i32, i32
  }
}

</mosaic_0001>

<bundles_post_ra>
// kernel: tpu_custom_call.1
= control target key start
LH: loop header
LB: loop body
LE: loop exit
PB: predicated region body
PF: predicated region fallthrough
CT: control target
= control target key end

     0   :  { %v80_v1 = vmov 0   ;;  %s114_s0 = inlined_call_operand.vmem [shape: f32[1,128], index: 0, kind: input, shape index: {}]   ;;  %s115_s1 = inlined_call_operand.vmem [shape: f32[8,1], index: 1, kind: input, shape index: {}]   ;;  %s116_s2 = inlined_call_operand.vmem [shape: f32[8,1], index: 2, kind: input, shape index: {}]   ;;  %s117_s3 = inlined_call_operand.hbm [shape: f32[8,128], index: 3, kind: output, shape index: {}]  }
   0x1   :  { %v16_v0 = vld [vmem:[%s115_s1] sm:$0xff]  ;;  %52 = vset.pattern.permute.xlu0 %v80_v1 }
   0x2   :  { %8 = vsyncpa [#allocation3], 0  ;;  %22 = vperm.xlu0 %52, %v16_v0   ;;  %v26_v2 = vld [vmem:[%s116_s2] sm:$0xff]  ;;  %s81_s18 = smov [#allocation2]   ;;  %s41_s1 = sshll.u32 %s117_s3, 4  ;;  %s42_s1 = int_to_ptr.hbm [resolvable:$true] %s41_s1 }
   0x3   :  { %v53_v4 = vld [vmem:[%s114_s0] ss:$0 sm:$0xff]  ;;  %s39_s19 = sshll.u32 %s81_s18, 4  ;;  %s40_s19 = int_to_ptr.vmem [resolvable:$true] %s39_s19 }
   0xa   :  { %29 = vperm.xlu0 %52, %v26_v2  }
  0x74   :  { %v23_v3 = vpop.permute.xlu0 %22 }
  0x75   :  { %v25_v5 = vsub.f32 %v53_v4, %v23_v3 }
  0x7c   :  { %v30_v6 = vpop.permute.xlu0 %29 }
  0x7d   :  { %v32_v7 = vmul.f32 %v30_v6, %v25_v5 }
  0x7f   :  { %33 = vst [vmem:[#allocation2] sm:$0xff] %v32_v7 }
  0x80   :  { %44 = dma.vmem_to_hbm [thread:$0]  %s40_s19, 128, %s42_s1, [#allocation3]  }
  0x81   :  { %78 = dma.done.wait [#allocation3], 128  }
  0x82   :  { %79 = vsyncadd [#allocation3], 4294967168 }
  0x83   :  { %49 = vsyncpa [#allocation3], 1 }

</bundles_post_ra>
